<compile_context>
chip_gen: v6e
topology: v6e:2x2x1
jax: 0.10.0
libtpu: 0.0.40
codegen_flags: <defaults>
</compile_context>

<pallas_src>
import math

import jax
import jax.numpy as jnp
from jax.experimental import pallas as pl
from jax.experimental.pallas import tpu as pltpu


def _lora_kernel(x_ref, wd_ref, wu_ref, o_ref):
    # x tile: [tm, in_features] in the input/compute dtype (e.g. bf16).
    x = x_ref[...]

    # lora_down: [tm, in] @ [in, r] -> f32 [tm, r].  wd is pre-transposed in the
    # wrapper, so this is a plain NN contraction with f32 accumulation.
    h = jnp.dot(x, wd_ref[...], preferred_element_type=jnp.float32)

    # lora_up: [tm, r] @ [r, out] -> f32 [tm, out].  wu is f32 with `scale` folded
    # in, and h stays f32 (PyTorch runs the LoRA branch in f32; the extra MXU passes
    # for f32 operands hide under DMA since the kernel is HBM-bound).
    y = jnp.dot(h, wu_ref[...], preferred_element_type=jnp.float32)

    o_ref[...] = y.astype(o_ref.dtype)  # cast back to x's dtype


def _round_up(v, mult):
    return ((v + mult - 1) // mult) * mult


def _pick_tm(in_features, out_features, r, x_itemsize, vmem_limit_bytes):
    """Largest row tile (multiple of 16, capped at 1024) whose exact VMEM footprint
    fits within vmem_limit_bytes."""
    r_lanes = max(_round_up(r, 128), 128)        # lane-padded r
    r_sub = max(_round_up(r, 8), 8)              # sublane-padded r
    fixed = (
        in_features * r_lanes * x_itemsize       # wd block [in, r] (lane-padded), Buffered(1)
        + r_sub * out_features * 4               # wu block [r, out] f32, Buffered(1)
        + 2 * 1024 * 1024                        # compiler internal scratch headroom
    )
    per_row = (
        2 * in_features * x_itemsize             # x block, double-buffered
        + 2 * out_features * x_itemsize          # out block, double-buffered
        + out_features * 4                       # f32 [tm, out] intermediate (y)
        + r_lanes * 4                            # f32 [tm, r] intermediate (h), lane-padded
    )
    tm = (vmem_limit_bytes - fixed) // max(per_row, 1)
    return int(min(1024, max(16, (tm // 16) * 16)))


def lora_injected_linear(x, w_down, w_up, scale, *, tm=None):
    """LoRA forward: (x @ w_down.T @ w_up.T) * scale, returned in x's dtype.

    x:      [..., in_features]
    w_down: [r, in_features]   (nn.Linear weight layout)
    w_up:   [out_features, r]  (nn.Linear weight layout)
    """
    orig_dtype = x.dtype
    *lead, in_features = x.shape
    r = w_down.shape[0]
    out_features = w_up.shape[0]

    m = int(math.prod(lead)) if lead else 1
    x2 = x.reshape(m, in_features)

    # Compute dtype for x / w_down = x's dtype (bf16 hits the native MXU, f32 acc).
    compute_dtype = orig_dtype
    # Pre-transpose once in the wrapper (grid-invariant): no per-step transposes.
    wd = jnp.asarray(w_down, jnp.float32).T.astype(compute_dtype)        # [in, r]
    wu = jnp.asarray(w_up, jnp.float32).T * jnp.float32(scale)           # [r, out], f32

    # Generation-aware VMEM budget (v5e/v6e: 128 MiB -> 80 MiB limit; v7x: 64 -> 40).
    try:
        vmem_cap = pltpu.get_tpu_info().vmem_capacity_bytes
    except Exception:  # pragma: no cover - conservative fallback (v7x per-TC size)
        vmem_cap = 64 * 1024 * 1024
    vmem_limit = min(int(vmem_cap * 0.625), 96 * 1024 * 1024)

    if tm is None:
        tm = _pick_tm(in_features, out_features, r,
                      jnp.dtype(compute_dtype).itemsize, vmem_limit)
    # Keep >= 2 grid steps when possible so v7x's 2 TensorCores both get work.
    if m > 16:
        tm = min(tm, _round_up(-(-m // 2), 16))
    tm = min(tm, m)  # a block equal to the full row extent is always legal

    grid = (pl.cdiv(m, tm),)

    out = pl.pallas_call(
        _lora_kernel,
        out_shape=jax.ShapeDtypeStruct((m, out_features), orig_dtype),
        grid_spec=pltpu.PrefetchScalarGridSpec(
            num_scalar_prefetch=0,
            grid=grid,
            in_specs=[
                pl.BlockSpec((tm, in_features), lambda i: (i, 0)),
                # Grid-invariant weights: single-buffered to halve their VMEM footprint.
                pl.BlockSpec((in_features, r), lambda i: (0, 0),
                             pipeline_mode=pl.Buffered(1)),
                pl.BlockSpec((r, out_features), lambda i: (0, 0),
                             pipeline_mode=pl.Buffered(1)),
            ],
            out_specs=pl.BlockSpec((tm, out_features), lambda i: (i, 0)),
        ),
        compiler_params=pltpu.CompilerParams(
            dimension_semantics=("parallel",),   # megacore sharding on v7x
            vmem_limit_bytes=vmem_limit,
        ),
    )(x2, wd, wu)

    return out.reshape(*lead, out_features)


if __name__ == "__main__":
    # Small shapes consistent with the module: batch=2, seq=8, hidden=32.
    batch, seq = 2, 8
    in_features, out_features = 32, 32
    lora_r, lora_alpha = 4, 8
    scale = 1.0 * lora_alpha / lora_r

    key = jax.random.PRNGKey(0)
    kx, kd, ku = jax.random.split(key, 3)

    # Input in bfloat16 to exercise the dtype round-trip.
    x = jax.random.normal(kx, (batch, seq, in_features), dtype=jnp.float32).astype(jnp.bfloat16)

    # Deterministic parameter init (shapes from __init__):
    #   lora_down.weight: [r, in] (kaiming_uniform-like bound), lora_up.weight: [out, r].
    # The reference zero-inits lora_up (output would be all zeros); use small random
    # values here so the kernel's compute path is actually exercised.
    bound = 1.0 / math.sqrt(in_features)
    w_down = jax.random.uniform(kd, (lora_r, in_features), jnp.float32, -bound, bound)
    w_up = jax.random.uniform(ku, (out_features, lora_r), jnp.float32, -0.01, 0.01)

    out = lora_injected_linear(x, w_down, w_up, scale)
    out = jax.block_until_ready(out)

    # Reference check in plain JAX (PyTorch f32-path math).
    ref = (x.astype(jnp.float32) @ w_down.T @ w_up.T * scale).astype(x.dtype)
    assert out.shape == (batch, seq, out_features)
    assert out.dtype == x.dtype
    err = jnp.max(jnp.abs(out.astype(jnp.float32) - ref.astype(jnp.float32)))
    assert jnp.allclose(out.astype(jnp.float32), ref.astype(jnp.float32), atol=1e-2), float(err)

    print("KERNEL_OK")
</pallas_src>

<mosaic_0001>
module attributes {stable_mosaic.version = 11 : i64} {
  func.func @_lora_kernel(%arg0: i32, %arg1: memref<16x32xbf16, #tpu.memory_space<vmem>>, %arg2: memref<32x4xbf16, #tpu.memory_space<vmem>>, %arg3: memref<4x32xf32, #tpu.memory_space<vmem>>, %arg4: memref<16x32xbf16, #tpu.memory_space<vmem>>) attributes {dimension_semantics = [#tpu.dimension_semantics<parallel>], iteration_bounds = array<i64: 1>, scalar_prefetch = 0 : i64, scratch_operands = 0 : i64, tpu.core_type = #tpu.core_type<tc>, window_params = [{transform_indices = @transform_0, window_bounds = array<i64: 16, 32>}, {pipeline_mode = #tpu.pipeline_mode<synchronous>, transform_indices = @transform_1, window_bounds = array<i64: 32, 4>}, {pipeline_mode = #tpu.pipeline_mode<synchronous>, transform_indices = @transform_2, window_bounds = array<i64: 4, 32>}, {transform_indices = @transform_3, window_bounds = array<i64: 16, 32>}]} {
    %c0 = arith.constant 0 : index
    %c0_0 = arith.constant 0 : index
    %0 = vector.load %arg1[%c0, %c0_0] : memref<16x32xbf16, #tpu.memory_space<vmem>>, vector<16x32xbf16>
    %c0_1 = arith.constant 0 : index
    %c0_2 = arith.constant 0 : index
    %1 = vector.load %arg2[%c0_1, %c0_2] : memref<32x4xbf16, #tpu.memory_space<vmem>>, vector<32x4xbf16>
    %cst = arith.constant dense<0.000000e+00> : vector<16x4xf32>
    %2 = tpu.matmul %0, %1, %cst {dimension_numbers = #tpu.dot_dimension_numbers<[1], [0], [0], [1], [0, 0, 1, 1], [], []>} : vector<16x32xbf16>, vector<32x4xbf16>, vector<16x4xf32> -> vector<16x4xf32>
    %c0_3 = arith.constant 0 : index
    %c0_4 = arith.constant 0 : index
    %3 = vector.load %arg3[%c0_3, %c0_4] : memref<4x32xf32, #tpu.memory_space<vmem>>, vector<4x32xf32>
    %cst_5 = arith.constant dense<0.000000e+00> : vector<16x32xf32>
    %4 = tpu.matmul %2, %3, %cst_5 {dimension_numbers = #tpu.dot_dimension_numbers<[1], [0], [0], [1], [0, 0, 1, 1], [], []>} : vector<16x4xf32>, vector<4x32xf32>, vector<16x32xf32> -> vector<16x32xf32>
    %5 = arith.truncf %4 : vector<16x32xf32> to vector<16x32xbf16>
    %c0_6 = arith.constant 0 : index
    %c0_7 = arith.constant 0 : index
    %6 = vector.load %arg4[%c0_6, %c0_7] : memref<16x32xbf16, #tpu.memory_space<vmem>>, vector<16x32xbf16>
    tpu.vector_store %arg4[%c0_6, %c0_7], %5 {strides = array<i32>} : memref<16x32xbf16, #tpu.memory_space<vmem>>, vector<16x32xbf16>,
    return
  }
  func.func @transform_0(%arg0: i32) -> (i32, i32) {
    %c0_i32 = arith.constant 0 : i32
    %c0_i32_0 = arith.constant 0 : i32
    return %arg0, %c0_i32 : i32, i32
  }
  func.func @transform_1(%arg0: i32) -> (i32, i32) {
    %c0_i32 = arith.constant 0 : i32
    %c0_i32_0 = arith.constant 0 : i32
    %c0_i32_1 = arith.constant 0 : i32
    return %c0_i32, %c0_i32_0 : i32, i32
  }
  func.func @transform_2(%arg0: i32) -> (i32, i32) {
    %c0_i32 = arith.constant 0 : i32
    %c0_i32_0 = arith.constant 0 : i32
    %c0_i32_1 = arith.constant 0 : i32
    return %c0_i32, %c0_i32_0 : i32, i32
  }
  func.func @transform_3(%arg0: i32) -> (i32, i32) {
    %c0_i32 = arith.constant 0 : i32
    %c0_i32_0 = arith.constant 0 : i32
    return %arg0, %c0_i32 : i32, i32
  }
}

</mosaic_0001>

<bundles_post_ra>
// kernel: tpu_custom_call.1
= control target key start
LH: loop header
LB: loop body
LE: loop exit
PB: predicated region body
PF: predicated region fallthrough
CT: control target
= control target key end

     0   :  { %v258_v1 = vmov 0.0   ;;  %vm259_vm0 = vmmov 0   ;;  %s298_s0 = inlined_call_operand.vmem [shape: bf16[16,32], index: 0, kind: input, shape index: {}]   ;;  %s299_s1 = inlined_call_operand.vmem [shape: bf16[32,4], index: 1, kind: input, shape index: {}]   ;;  %s300_s2 = inlined_call_operand.vmem [shape: f32[4,32], index: 2, kind: input, shape index: {}]   ;;  %s301_s3 = inlined_call_operand.hbm [shape: bf16[16,32], index: 3, kind: output, shape index: {}]  }
   0x1   :  { %v233_v0 = vld [vmem:[%s299_s1 + $0x8] sm:$0xff]   ;;  %215 = vmatprep.subr.bf16.mxu0 %v258_v1  ;;  %v234_v2 = vld [vmem:[%s299_s1] sm:$0xff]   ;;  %219 = vmatprep.mubr.msk.bf16.mxu0 %vm259_vm0, %v258_v1 }
   0x2   :  { %216 = vmatpush3.bf16.msra.mxu0 %v233_v0 }
   0x3   :  { %217 = vmatprep.subr.bf16.mxu0 %v258_v1 }
   0x4   :  { %8 = vsyncpa [#allocation3], 0  ;;  %v235_v3 = vld [vmem:[%s298_s0] sm:$0xff]   ;;  %vm39_vm1 = vcmask 261120   ;;  %vm92_vm2 = vcmask 1043456   ;;  %vm85_vm3 = vcmask 31744  }
   0x5   :  { %v84_v4 = vld [vmem:[%s300_s2] sm:$0xf]  ;;  %s260_s1 = smov [#allocation2]   ;;  %vm179_vm4 = vcmask 257024  }
   0x6   :  { %218 = vmatpush3.bf16.msra.mxu0 %v234_v2  ;;  %223 = vmatprep.subr.msk.mxu1 %vm92_vm2, %v84_v4  ;;  %s187_s20 = sshll.u32 %s260_s1, 4  ;;  %s188_s20 = int_to_ptr.vmem [resolvable:$true] %s187_s20 }
   0x7   :  { %224 = vmatpush3.msk.msra.mxu1 %vm92_vm2, %v84_v4  ;;  %s236_s0 = scalar_lea.vmem %s188_s20, 128  ;;  %p241_p1 = scmp.lt.s32.totalorder %s188_s20, %s188_s20 }
   0x8   :  { %p237_p0 = scmp.ne.s32.totalorder %s188_s20, %s236_s0  ;;  %p242_p2 = scmp.lt.s32.totalorder %s236_s0, %s236_s0 }
   0x9   :  { %220 = vmatmul.mubr.msk.bf16.vlgmr.msra.gmra.mxu0 %vm39_vm1, %v235_v3 }
   0xa   :  { %p243_p3 = por %p242_p2, %p241_p1 }
   0xc   :  { %p244_p4 = pnand %p243_p3, %p237_p0 }
  0xc9   :  { %v77_v5 = vpop.f32.mrf.mxu0 }
  0xca   :  { %225 = vmatprep.mubr.msk.f32.mxu1 %vm85_vm3, %v77_v5 }
  0xcb   :  { %v221_v6 = vpop.f32.mrf.mxu0 }
  0xcd   :  { %v80_v7 = vpop.f32.mrf.mxu0 }
  0xce   :  { %226 = vmatmul.mubr.msk.f32.vlgmr.msra.gmra.mxu1 %vm85_vm3, %v80_v7 }
  0xcf   :  { %v222_v8 = vpop.f32.mrf.mxu0 }
 0x18e   :  { %v227_v9 = vpop.f32.mrf.mxu1 }
 0x18f   :  { %v208_v10 = vpack.c.bf16 %v227_v9, %v227_v9 }
 0x190   :  { %v162_v11 = vpop.f32.mrf.mxu1 }
 0x191   :  { %181 = vst.msk [vmem:[#allocation2 + $0x4] sm:$0xf] %vm179_vm4, %v208_v10  ;;  %v207_v12 = vpack.c.bf16 %v162_v11, %v162_v11 }
 0x193   :  { %180 = vst.msk [vmem:[#allocation2] sm:$0xf] %vm179_vm4, %v207_v12 }
 0x194   :  { %247 = shalt.err (!%p244_p4)
}
 0x195   :  { %s261_s2 = smov 64   ;;  %s262_s21 = smov 4  }
 0x196   :  { %193 = dma.vmem_to_hbm [thread:$0]  %s188_s20, 128, %s301_s3, [#allocation3], %s261_s2, %s261_s2, %s262_s21  }
 0x197   :  { %256 = dma.done.wait [#allocation3], 128  }
 0x198   :  { %257 = vsyncadd [#allocation3], 4294967168 }
 0x199   :  { %197 = vsyncpa [#allocation3], 1 }

</bundles_post_ra>
